<compile_context>
chip_gen: v7x
topology: tpu7x:2x2x1
jax: 0.10.0
libtpu: 0.0.40
codegen_flags: <defaults>
</compile_context>

<pallas_src>
import jax
import jax.numpy as jnp
from jax.experimental import pallas as pl
from jax.experimental.pallas import tpu as pltpu


def _round_up(x, m):
    return ((x + m - 1) // m) * m


def _largest_divisor_tile(padded_dim, granule, max_tile):
    """Largest multiple of `granule` that divides `padded_dim` and is <= max_tile."""
    t = (min(max_tile, padded_dim) // granule) * granule
    while t > granule:
        if padded_dim % t == 0:
            return t
        t -= granule
    return granule


# --------------------------------------------------------------------------- #
# Kernels
# --------------------------------------------------------------------------- #
def _fc_kernel_single_k(x_ref, w_ref, b_ref, o_ref):
    """o = x @ w + b, full K in one tile (no accumulator scratch needed)."""
    acc = jnp.dot(x_ref[...], w_ref[...], preferred_element_type=jnp.float32)
    o_ref[...] = (acc + b_ref[...]).astype(o_ref.dtype)


def _fc_kernel_multi_k(x_ref, w_ref, b_ref, o_ref, acc_ref):
    """o = x @ w + b with a K reduction axis and f32 VMEM accumulator."""
    k = pl.program_id(2)

    @pl.when(k == 0)
    def _():
        acc_ref[...] = jnp.zeros_like(acc_ref)

    acc_ref[...] += jnp.dot(x_ref[...], w_ref[...],
                            preferred_element_type=jnp.float32)

    @pl.when(k == pl.num_programs(2) - 1)
    def _():
        o_ref[...] = (acc_ref[...] + b_ref[...]).astype(o_ref.dtype)


# --------------------------------------------------------------------------- #
# Parameter preparation (do this ONCE per Linear layer, not per call)
# --------------------------------------------------------------------------- #
def prepare_projector_fc_params(weight, bias, *, compute_dtype=jnp.bfloat16):
    """Pad / transpose / cast the Linear parameters once.

    weight : (out_features, in_features) float32  (PyTorch layout)
    bias   : (out_features,) float32
    Returns a dict with the (Kp, Np) compute-dtype weight and (1, Np) f32 bias.
    """
    out_features, in_features = weight.shape
    Kp = _round_up(in_features, 128)
    Np = _round_up(out_features, 128)

    w_t = weight.T                                    # (in, out): plain (M,K)x(K,N) dot
    if (Kp, Np) != (in_features, out_features):
        w_t = jnp.pad(w_t, ((0, Kp - in_features), (0, Np - out_features)))
    w_p = w_t.astype(compute_dtype)

    b_pad = bias if Np == out_features else jnp.pad(bias, (0, Np - out_features))
    b_p = b_pad.reshape(1, Np).astype(jnp.float32)

    return dict(w=w_p, b=b_p,
                in_features=in_features, out_features=out_features,
                compute_dtype=compute_dtype)


# --------------------------------------------------------------------------- #
# Forward
# --------------------------------------------------------------------------- #
def projector_fc(inputs, params, *, training=False, p=0.5, dropout_key=None,
                 tm_max=256, tn_max=512, tk_max=2048):
    """JAX/Pallas equivalent of ProjectorFC.forward.

    inputs : (N, C, W, H) float32  (W == H == 1 required by the module's view)
    params : output of prepare_projector_fc_params(weight, bias)
    """
    N, C, W, H = inputs.shape
    in_features = params["in_features"]
    out_features = params["out_features"]
    if C * W * H != in_features:
        raise ValueError("in_features must equal C*W*H")
    if W * H != 1:
        raise ValueError("ProjectorFC's final view requires W == H == 1")

    cdt = params["compute_dtype"]
    w_p = params["w"]
    b_p = params["b"]
    Kp, Np = w_p.shape

    x2d = inputs.reshape(N, in_features)

    if training:
        if not (0.0 <= p < 1.0):
            raise ValueError("dropout p must be in [0, 1) in training mode")
        if p > 0.0:
            if dropout_key is None:
                raise ValueError("training=True requires a dropout_key")
            # Cheap prologue pass over x (x << W traffic); one mask per input
            # element, reproducible regardless of tiling.
            # TODO(synk): matches Dropout(p)'s distribution; cannot bitwise-match
            # torch's RNG stream.
            keep = jax.random.bernoulli(dropout_key, 1.0 - p, x2d.shape)
            x2d = jnp.where(keep, x2d * (1.0 / (1.0 - p)), jnp.zeros_like(x2d))

    # Dropout math in f32, cast just before the matmul (safe on v5e's VPU too).
    x2d = x2d.astype(cdt)

    cdt_size = jnp.dtype(cdt).itemsize
    m_gran = {4: 8, 2: 16, 1: 32}[cdt_size]            # sublane granularity
    Mp = _round_up(N, m_gran)
    if Mp != N or Kp != in_features:
        x_p = jnp.pad(x2d, ((0, Mp - N), (0, Kp - in_features)))
    else:
        x_p = x2d

    # Tile selection: divisors of the padded dims -> zero extra padding beyond
    # the 128 alignment done once in prepare_projector_fc_params.
    tm = _largest_divisor_tile(Mp, m_gran, tm_max)
    tn = _largest_divisor_tile(Np, 128, tn_max)
    tk = _largest_divisor_tile(Kp, 128, tk_max)

    # v7x has 2 TensorCores: make sure at least 2 blocks exist on a parallel
    # grid axis, otherwise one core idles.
    if (Mp // tm) * (Np // tn) < 2:
        if Np // 128 >= 2:
            tn = _largest_divisor_tile(Np, 128, Np // 2)
        elif Mp // m_gran >= 2:
            tm = _largest_divisor_tile(Mp, m_gran, Mp // 2)

    nk = Kp // tk
    out_dtype = inputs.dtype
    out_size = jnp.dtype(out_dtype).itemsize

    # VMEM budget from the actual double-buffered tile footprint, with
    # headroom; clamped so it stays safe on v7x (64 MiB physical VMEM) while
    # still allowing large tiles on v5e/v6e.
    footprint = (2 * (tm * tk + tk * tn) * cdt_size        # x + w, double buffered
                 + 2 * (tm * tn + tn) * out_size           # out + bias, double buffered
                 + tm * tn * 4)                            # f32 accumulator
    vmem_limit = int(min(max(3 * footprint, 32 * 1024 * 1024), 48 * 1024 * 1024))

    cost = pl.CostEstimate(
        flops=2 * Mp * Kp * Np,
        transcendentals=0,
        bytes_accessed=int(Mp * Kp * cdt_size * (Np // tn)     # x re-streamed per j
                           + Kp * Np * cdt_size * (Mp // tm)   # w re-streamed per i
                           + Mp * Np * out_size + Np * 4),
    )

    if nk == 1:
        grid = (Mp // tm, Np // tn)
        y_p = pl.pallas_call(
            _fc_kernel_single_k,
            out_shape=jax.ShapeDtypeStruct((Mp, Np), out_dtype),
            grid_spec=pltpu.PrefetchScalarGridSpec(
                num_scalar_prefetch=0,
                grid=grid,
                in_specs=[
                    pl.BlockSpec((tm, Kp), lambda i, j: (i, 0)),   # x panel
                    pl.BlockSpec((Kp, tn), lambda i, j: (0, j)),   # w panel
                    pl.BlockSpec((1, tn), lambda i, j: (0, j)),    # bias
                ],
                out_specs=pl.BlockSpec((tm, tn), lambda i, j: (i, j)),
            ),
            compiler_params=pltpu.CompilerParams(
                dimension_semantics=("parallel", "parallel"),
                vmem_limit_bytes=vmem_limit,
            ),
            cost_estimate=cost,
        )(x_p, w_p, b_p)
    else:
        grid = (Mp // tm, Np // tn, nk)
        y_p = pl.pallas_call(
            _fc_kernel_multi_k,
            out_shape=jax.ShapeDtypeStruct((Mp, Np), out_dtype),
            grid_spec=pltpu.PrefetchScalarGridSpec(
                num_scalar_prefetch=0,
                grid=grid,
                in_specs=[
                    pl.BlockSpec((tm, tk), lambda i, j, k: (i, k)),   # x tile
                    pl.BlockSpec((tk, tn), lambda i, j, k: (k, j)),   # w tile
                    pl.BlockSpec((1, tn), lambda i, j, k: (0, j)),    # bias
                ],
                out_specs=pl.BlockSpec((tm, tn), lambda i, j, k: (i, j)),
                scratch_shapes=[pltpu.VMEM((tm, tn), jnp.float32)],
            ),
            compiler_params=pltpu.CompilerParams(
                dimension_semantics=("parallel", "parallel", "arbitrary"),
                vmem_limit_bytes=vmem_limit,
            ),
            cost_estimate=cost,
        )(x_p, w_p, b_p)

    # Drop padding only if there is any (skip the slice on aligned shapes).
    y = y_p if (Mp == N and Np == out_features) else y_p[:N, :out_features]
    return y.reshape(N, out_features, W, H)    # glue: back to NCHW


# --------------------------------------------------------------------------- #
# Demo / self-test
# --------------------------------------------------------------------------- #
if __name__ == "__main__":
    key = jax.random.PRNGKey(0)
    kx1, kw1, kb1, kx2, kw2, kb2, kx3, kw3, kb3, kdrop = jax.random.split(key, 10)

    def torch_linear_init(kw, kb, out_f, in_f):
        bound = 1.0 / (in_f ** 0.5)
        w = jax.random.uniform(kw, (out_f, in_f), dtype=jnp.float32,
                               minval=-bound, maxval=bound)
        b = jax.random.uniform(kb, (out_f,), dtype=jnp.float32,
                               minval=-bound, maxval=bound)
        return w, b

    def check(x, w, b, y, atol_f32):
        """y vs. matched-precision ref (tight) and full-f32 ref (loose)."""
        N = x.shape[0]
        x2 = x.reshape(N, -1)
        ref_match = (jnp.dot(x2.astype(jnp.bfloat16), w.T.astype(jnp.bfloat16),
                             preferred_element_type=jnp.float32) + b)
        ref_match = ref_match.reshape(y.shape)
        ref_f32 = (x2 @ w.T + b).reshape(y.shape)
        assert jnp.allclose(y, ref_match, atol=1e-3, rtol=1e-3), "matched-ref mismatch"
        assert jnp.allclose(y, ref_f32, atol=atol_f32, rtol=5e-2), "f32-ref mismatch"

    # ---- Case 1: tiny shapes consistent with the module (spatial 1x1). ------
    N1, C1, out1 = 2, 32, 16
    x1 = jax.random.normal(kx1, (N1, C1, 1, 1), dtype=jnp.float32)
    w1, b1 = torch_linear_init(kw1, kb1, out1, C1)
    params1 = prepare_projector_fc_params(w1, b1)          # pad/cast/transpose once
    y1 = jax.block_until_ready(projector_fc(x1, params1, training=False))
    assert y1.shape == (N1, out1, 1, 1)
    check(x1, w1, b1, y1, atol_f32=3e-2)

    # ---- Case 2: multi-block parallel grid, no OUT over-padding (384). ------
    N2, C2, out2 = 16, 512, 384
    x2 = jax.random.normal(kx2, (N2, C2, 1, 1), dtype=jnp.float32)
    w2, b2 = torch_linear_init(kw2, kb2, out2, C2)
    params2 = prepare_projector_fc_params(w2, b2)
    y2 = jax.block_until_ready(projector_fc(x2, params2, training=False))
    assert y2.shape == (N2, out2, 1, 1)
    check(x2, w2, b2, y2, atol_f32=5e-2)

    # ---- Case 3: force the multi-K accumulator path (small tk cap). ---------
    N3, C3, out3 = 8, 512, 256
    x3 = jax.random.normal(kx3, (N3, C3, 1, 1), dtype=jnp.float32)
    w3, b3 = torch_linear_init(kw3, kb3, out3, C3)
    params3 = prepare_projector_fc_params(w3, b3)
    y3 = jax.block_until_ready(projector_fc(x3, params3, training=False, tk_max=256))
    assert y3.shape == (N3, out3, 1, 1)
    check(x3, w3, b3, y3, atol_f32=5e-2)

    # ---- Training-mode smoke test (wrapper-side dropout; stochastic). -------
    y_tr = projector_fc(x2, params2, training=True, p=0.5, dropout_key=kdrop)
    y_tr = jax.block_until_ready(y_tr)
    assert y_tr.shape == (N2, out2, 1, 1)
    assert bool(jnp.all(jnp.isfinite(y_tr)))

    print("KERNEL_OK")
</pallas_src>

<mosaic_0001>
module attributes {stable_mosaic.version = 11 : i64} {
  func.func @_fc_kernel_single_k(%arg0: i32, %arg1: i32, %arg2: memref<16x128xbf16, #tpu.memory_space<vmem>>, %arg3: memref<128x128xbf16, #tpu.memory_space<vmem>>, %arg4: memref<1x128xf32, #tpu.memory_space<vmem>>, %arg5: memref<16x128xf32, #tpu.memory_space<vmem>>) attributes {dimension_semantics = [#tpu.dimension_semantics<parallel>, #tpu.dimension_semantics<parallel>], iteration_bounds = array<i64: 1, 1>, scalar_prefetch = 0 : i64, scratch_operands = 0 : i64, tpu.core_type = #tpu.core_type<tc>, window_params = [{transform_indices = @transform_0, window_bounds = array<i64: 16, 128>}, {transform_indices = @transform_1, window_bounds = array<i64: 128, 128>}, {transform_indices = @transform_2, window_bounds = array<i64: 1, 128>}, {transform_indices = @transform_3, window_bounds = array<i64: 16, 128>}]} {
    %c0 = arith.constant 0 : index
    %c0_0 = arith.constant 0 : index
    %0 = vector.load %arg2[%c0, %c0_0] : memref<16x128xbf16, #tpu.memory_space<vmem>>, vector<16x128xbf16>
    %c0_1 = arith.constant 0 : index
    %c0_2 = arith.constant 0 : index
    %1 = vector.load %arg3[%c0_1, %c0_2] : memref<128x128xbf16, #tpu.memory_space<vmem>>, vector<128x128xbf16>
    %cst = arith.constant dense<0.000000e+00> : vector<16x128xf32>
    %2 = tpu.matmul %0, %1, %cst {dimension_numbers = #tpu.dot_dimension_numbers<[1], [0], [0], [1], [0, 0, 1, 1], [], []>} : vector<16x128xbf16>, vector<128x128xbf16>, vector<16x128xf32> -> vector<16x128xf32>
    %c0_3 = arith.constant 0 : index
    %c0_4 = arith.constant 0 : index
    %3 = vector.load %arg4[%c0_3, %c0_4] : memref<1x128xf32, #tpu.memory_space<vmem>>, vector<1x128xf32>
    %4 = vector.broadcast %3 : vector<1x128xf32> to vector<16x128xf32>
    %5 = arith.addf %2, %4 : vector<16x128xf32>
    %c0_5 = arith.constant 0 : index
    %c0_6 = arith.constant 0 : index
    %6 = vector.load %arg5[%c0_5, %c0_6] : memref<16x128xf32, #tpu.memory_space<vmem>>, vector<16x128xf32>
    tpu.vector_store %arg5[%c0_5, %c0_6], %5 {strides = array<i32>} : memref<16x128xf32, #tpu.memory_space<vmem>>, vector<16x128xf32>,
    return
  }
  func.func @transform_0(%arg0: i32, %arg1: i32) -> (i32, i32) {
    %c0_i32 = arith.constant 0 : i32
    %c0_i32_0 = arith.constant 0 : i32
    return %arg0, %c0_i32 : i32, i32
  }
  func.func @transform_1(%arg0: i32, %arg1: i32) -> (i32, i32) {
    %c0_i32 = arith.constant 0 : i32
    %c0_i32_0 = arith.constant 0 : i32
    return %c0_i32, %arg1 : i32, i32
  }
  func.func @transform_2(%arg0: i32, %arg1: i32) -> (i32, i32) {
    %c0_i32 = arith.constant 0 : i32
    %c0_i32_0 = arith.constant 0 : i32
    return %c0_i32, %arg1 : i32, i32
  }
  func.func @transform_3(%arg0: i32, %arg1: i32) -> (i32, i32) {
    %c0_i32 = arith.constant 0 : i32
    return %arg0, %arg1 : i32, i32
  }
}

</mosaic_0001>

<bundles_post_ra>
// kernel: tpu_custom_call.1
= control target key start
LH: loop header
LB: loop body
LE: loop exit
PB: predicated region body
PF: predicated region fallthrough
CT: control target
= control target key end

     0   :  { %8 = vsyncpa [#allocation3], 0  ;;  %s381_s0 = inlined_call_operand.hbm [shape: bf16[16,128], index: 0, kind: input, shape index: {}]   ;;  %s382_s1 = inlined_call_operand.hbm [shape: bf16[128,128], index: 1, kind: input, shape index: {}]   ;;  %s383_s2 = inlined_call_operand.vmem [shape: f32[1,128], index: 2, kind: input, shape index: {}]   ;;  %s384_s3 = inlined_call_operand.hbm [shape: f32[16,128], index: 3, kind: output, shape index: {}]  }
   0x1   :  { %9 = vsyncpa [#allocation6], 0 }
   0x2   :  { %10 = vsyncpa [#allocation4], 0  ;;  %s313_s12 = smov [#allocation2]   ;;  %s241_s16 = scalar_lea.hbm %s381_s0, 128 }
   0x3   :  { %s16_s13 = sshll.u32 %s313_s12, 4  ;;  %p242_p0 = scmp.ne.s32.totalorder %s381_s0, %s241_s16  ;;  %s17_s13 = int_to_ptr.vmem [resolvable:$true] %s16_s13 }
   0x4   :  { %p245_p1 = scmp.lt.u32.totalorder %s241_s16, %s381_s0 }
   0x6   :  { %p247_p2 = pnand %p245_p1, %p242_p0 }
   0x8   :  { %250 = shalt.err (!%p247_p2)
}
   0x9   :  { %s251_s21 = scalar_lea.vmem %s17_s13, 128  ;;  %p256_p4 = scmp.lt.s32.totalorder %s17_s13, %s17_s13 }
   0xa   :  { %p252_p3 = scmp.ne.s32.totalorder %s17_s13, %s251_s21  ;;  %p257_p5 = scmp.lt.s32.totalorder %s251_s21, %s251_s21 }
   0xc   :  { %p258_p6 = por %p257_p5, %p256_p4 }
   0xe   :  { %p259_p7 = pnand %p258_p6, %p252_p3 }
  0x10   :  { %262 = shalt.err (!%p259_p7)
}
  0x11   :  { %s314_s22 = smov 64   ;;  %s315_s23 = smov 4  }
  0x12   :  { %22 = dma.hbm_to_vmem [thread:$0]  %s381_s0, 128, %s17_s13, [#allocation3], %s314_s22, %s314_s22, %s315_s23  }
  0x13   :  { %s316_s26 = smov [#allocation5]   ;;  %s263_s30 = scalar_lea.hbm %s382_s1, 1024 }
  0x14   :  { %s28_s27 = sshll.u32 %s316_s26, 4  ;;  %p264_p8 = scmp.ne.s32.totalorder %s382_s1, %s263_s30  ;;  %s29_s27 = int_to_ptr.vmem [resolvable:$true] %s28_s27 }
  0x15   :  { %p267_p9 = scmp.lt.u32.totalorder %s263_s30, %s382_s1 }
  0x17   :  { %p269_p10 = pnand %p267_p9, %p264_p8 }
  0x19   :  { %272 = shalt.err (!%p269_p10)
}
  0x1a   :  { %s273_s8 = scalar_lea.vmem %s29_s27, 1024  ;;  %p278_p12 = scmp.lt.s32.totalorder %s29_s27, %s29_s27 }
  0x1b   :  { %p274_p11 = scmp.ne.s32.totalorder %s29_s27, %s273_s8  ;;  %p279_p13 = scmp.lt.s32.totalorder %s273_s8, %s273_s8 }
  0x1d   :  { %p280_p0 = por %p279_p13, %p278_p12 }
  0x1f   :  { %p281_p1 = pnand %p280_p0, %p274_p11 }
  0x21   :  { %284 = shalt.err (!%p281_p1)
}
  0x22   :  { %34 = dma.hbm_to_vmem [thread:$0]  %s382_s1, 1024, %s29_s27, [#allocation6], %s314_s22, %s314_s22, %s315_s23  }
  0x23   :  { %307 = dma.done.wait [#allocation3], 128  }
  0x24   :  { %308 = vsyncadd [#allocation3], 4294967168 }
  0x25   :  { %309 = dma.done.wait [#allocation6], 1024  }
  0x26   :  { %310 = vsyncadd [#allocation6], 4294966272  ;;  %v317_v0 = vmov 0.0   ;;  %vm318_vm0 = vmmov 0   ;;  %v232_v1 = vld [vmem:[#allocation5] sm:$0xff]   ;;  %v233_v2 = vld [vmem:[#allocation5 + $0x8] sm:$0xff]  }
  0x27   :  { %203 = vmatprep.subr.bf16.mxu0 %v317_v0  ;;  %219 = vmatprep.mubr.msk.bf16.mxu0 %vm318_vm0, %v317_v0  ;;  %v234_v3 = vld [vmem:[#allocation5 + $0x10] sm:$0xff]   ;;  %v235_v4 = vld [vmem:[#allocation5 + $0x18] sm:$0xff]   ;;  %v236_v5 = vld [vmem:[#allocation5 + $0x20] sm:$0xff]   ;;  %s319_s11 = smov [#allocation7]  }
  0x28   :  { %204 = vmatpush3.bf16.msra.mxu0 %v232_v1  ;;  %v237_v6 = vld [vmem:[#allocation5 + $0x28] sm:$0xff]   ;;  %v238_v7 = vld [vmem:[#allocation5 + $0x30] sm:$0xff]   ;;  %v239_v8 = vld [vmem:[#allocation5 + $0x38] sm:$0xff]   ;;  %s171_s12 = sshll.u32 %s319_s11, 4  ;;  %s172_s12 = int_to_ptr.vmem [resolvable:$true] %s171_s12 }
  0x29   :  { %205 = vmatprep.subr.bf16.mxu0 %v317_v0  ;;  %v240_v9 = vld [vmem:[#allocation2] sm:$0xff]   ;;  %s285_s13 = scalar_lea.vmem %s172_s12, 256  ;;  %p290_p3 = scmp.lt.s32.totalorder %s172_s12, %s172_s12 }
  0x2a   :  { %v184_v10 = vld [vmem:[%s383_s2] ss:$0 sm:$0xff]  ;;  %p286_p2 = scmp.ne.s32.totalorder %s172_s12, %s285_s13  ;;  %p291_p4 = scmp.lt.s32.totalorder %s285_s13, %s285_s13 }
  0x2c   :  { %206 = vmatpush3.bf16.msra.mxu0 %v233_v2  ;;  %p292_p5 = por %p291_p4, %p290_p3 }
  0x2d   :  { %207 = vmatprep.subr.bf16.mxu0 %v317_v0 }
  0x2e   :  { %p293_p6 = pnand %p292_p5, %p286_p2 }
  0x30   :  { %208 = vmatpush3.bf16.msra.mxu0 %v234_v3 }
  0x31   :  { %209 = vmatprep.subr.bf16.mxu0 %v317_v0 }
  0x34   :  { %210 = vmatpush3.bf16.msra.mxu0 %v235_v4 }
  0x35   :  { %211 = vmatprep.subr.bf16.mxu0 %v317_v0 }
  0x38   :  { %212 = vmatpush3.bf16.msra.mxu0 %v236_v5 }
  0x39   :  { %213 = vmatprep.subr.bf16.mxu0 %v317_v0 }
  0x3c   :  { %214 = vmatpush3.bf16.msra.mxu0 %v237_v6 }
  0x3d   :  { %215 = vmatprep.subr.bf16.mxu0 %v317_v0 }
  0x40   :  { %216 = vmatpush3.bf16.msra.mxu0 %v238_v7 }
  0x41   :  { %217 = vmatprep.subr.bf16.mxu0 %v317_v0 }
  0x44   :  { %218 = vmatpush3.bf16.msra.mxu0 %v239_v8 }
  0x47   :  { %220 = vmatmul.mubr.bf16.vlgmr.msra.gmra.mrb[0].mxu0 %v240_v9 }
 0x11a   :  { %v157_v11 = vpop.f32.mrb[0].mxu0 }
 0x11b   :  { %v158_v12 = vadd.f32 %v184_v10, %v157_v11  ;;  %v221_v13 = vpop.f32.mrb[1].mxu0 }
 0x11c   :  { %v160_v14 = vpop.f32.mrb[2].mxu0 }
 0x11d   :  { %164 = vst [vmem:[#allocation7] sm:$0xff] %v158_v12  ;;  %v161_v15 = vadd.f32 %v184_v10, %v160_v14  ;;  %v222_v16 = vpop.f32.mrb[3].mxu0 }
 0x11f   :  { %165 = vst [vmem:[#allocation7 + $0x8] sm:$0xff] %v161_v15 }
 0x120   :  { %296 = shalt.err (!%p293_p6)
}
 0x121   :  { %s297_s15 = scalar_lea.hbm %s384_s3, 256 }
 0x122   :  { %p298_p7 = scmp.ne.s32.totalorder %s384_s3, %s297_s15  ;;  %p301_p8 = scmp.lt.u32.totalorder %s297_s15, %s384_s3 }
 0x124   :  { %p303_p9 = pnand %p301_p8, %p298_p7 }
 0x126   :  { %306 = shalt.err (!%p303_p9)
}
 0x127   :  { %s320_s20 = smov 128   ;;  %s321_s21 = smov 8  }
 0x128   :  { %177 = dma.vmem_to_hbm [thread:$0]  %s172_s12, 256, %s384_s3, [#allocation4], %s320_s20, %s320_s20, %s321_s21  }
 0x129   :  { %311 = dma.done.wait [#allocation4], 256  }
 0x12a   :  { %312 = vsyncadd [#allocation4], 4294967040 }
 0x12b   :  { %181 = vsyncpa [#allocation3], 1 }
 0x12c   :  { %182 = vsyncpa [#allocation6], 1 }
 0x12d   :  { %183 = vsyncpa [#allocation4], 1 }

</bundles_post_ra>
